<compile_context>
chip_gen: v7x
topology: tpu7x:2x2x1
jax: 0.10.0
libtpu: 0.0.40
codegen_flags: <defaults>
</compile_context>

<pallas_src>
import functools
import math

import jax
import jax.numpy as jnp
from jax.experimental import pallas as pl
from jax.experimental.pallas import tpu as pltpu

_SUBLANE_F32 = 8
_LANE = 128
# Below this element count the fixed pallas_call launch/step overhead dwarfs a
# single elementwise add — let XLA fuse it instead.
_MIN_PALLAS_ELEMS = 1 << 16


def make_positional_encoding(d_model: int, max_len: int = 10,
                             dtype=jnp.float32) -> jnp.ndarray:
    """Deterministic pe buffer, identical to the PyTorch __init__ math."""
    if d_model % 2 != 0:
        # The PyTorch original also breaks for odd d_model (shape mismatch on pe[:, 1::2]).
        raise ValueError("d_model must be even.")
    position = jnp.arange(max_len, dtype=jnp.float32)[:, None]               # (max_len, 1)
    div_term = jnp.exp(
        jnp.arange(0, d_model, 2, dtype=jnp.float32) * (-math.log(10000.0) / d_model)
    )                                                                         # (d_model//2,)
    pe = jnp.zeros((max_len, d_model), dtype=jnp.float32)
    pe = pe.at[:, 0::2].set(jnp.sin(position * div_term))
    pe = pe.at[:, 1::2].set(jnp.cos(position * div_term))
    return pe.astype(dtype)


def _add_pe_kernel(x_ref, pe_ref, o_ref):
    # x_ref/o_ref: (tR, tC); pe_ref: (1, tC) — broadcasts over the batch rows.
    o_ref[...] = x_ref[...] + pe_ref[...]


def _sublane_multiple(itemsize: int) -> int:
    # Sub-32-bit dtypes pack along sublanes: f32 -> 8 rows, bf16 -> 16, int8/fp8 -> 32.
    return _SUBLANE_F32 * max(1, 4 // max(1, itemsize))


@functools.lru_cache(maxsize=None)
def _vmem_budget():
    """(tile_budget_bytes, vmem_limit_bytes), derived from the chip generation.

    v5e/v6e (128 MiB physical VMEM): limit 64 MiB, ~21 MiB of double-buffered tiles.
    v7x (64 MiB physical per TC):    limit 48 MiB, ~16 MiB of double-buffered tiles.
    """
    vmem_cap = None
    try:
        vmem_cap = getattr(pltpu.get_tpu_info(), "vmem_capacity_bytes", None)
    except Exception:
        vmem_cap = None
    if not vmem_cap:
        vmem_cap = 64 * 1024 * 1024  # conservative fallback: v7x per-TC physical VMEM
    vmem_limit = min(64 * 1024 * 1024, (vmem_cap * 3) // 4)
    tile_budget = vmem_limit // 3
    return tile_budget, vmem_limit


def _choose_tiles(B: int, L: int, itemsize: int, budget: int, sublane: int):
    """Return (tR, tC) respecting the VMEM budget, or None to fall back to XLA."""
    tR_min = min(B, sublane)

    def max_rows(tC):
        # double-buffered x + out tiles plus the double-buffered (1, tC) pe tile:
        #   2 * (2*tR + 1) * tC * itemsize <= budget
        return (budget // (2 * tC * itemsize) - 1) // 2

    if L % _LANE == 0:
        if max_rows(L) >= tR_min:
            # Full flattened row per tile: one contiguous HBM span per DMA and pe
            # is DMA'd exactly once for the whole call.
            tC = L
        else:
            bytes_per_col = 2 * (2 * tR_min + 1) * itemsize
            max_cols = budget // bytes_per_col
            tC = min(L, max(_LANE, (max_cols // _LANE) * _LANE))
    else:
        # Non-lane-aligned flattened row: only take the Pallas path if a full row
        # fits the VMEM budget (full-extent blocks satisfy the (8,128) rule);
        # otherwise signal the caller to fall back to the XLA-fused add instead of
        # risking a VMEM OOM with an unbounded full-extent column block.
        if max_rows(L) < tR_min:
            return None
        tC = L

    rows = max_rows(tC)
    if rows >= B:
        tR = B
    else:
        tR = min(B, max(sublane, (rows // sublane) * sublane))

    # Keep >=2 grid steps for medium/large batches so both TensorCores on a
    # dual-TC chip (v7x) stream; costs only one extra ~0.35us step on 1-TC chips.
    if tC == L and tR >= B and B >= 2 * sublane:
        half = -(-B // 2)                                  # ceil(B/2)
        tR = min(tR, -(-half // sublane) * sublane)        # round up to sublane multiple

    return tR, tC


def _positional_encoding_pallas(x2: jnp.ndarray, pe2: jnp.ndarray):
    """x2: (B, L), pe2: (1, L). Returns x2 + pe2 (broadcast over rows), or None."""
    B, L = x2.shape
    itemsize = x2.dtype.itemsize
    sublane = _sublane_multiple(itemsize)
    budget, vmem_limit = _vmem_budget()
    tiles = _choose_tiles(B, L, itemsize, budget, sublane)
    if tiles is None:
        return None
    tR, tC = tiles
    # Column tiles on the OUTER axis, batch rows on the INNER axis: the pe block
    # index is unchanged across inner steps, so Pallas keeps it VMEM-resident and
    # only re-DMAs pe when the column tile changes (never, when tC == L).
    grid = (pl.cdiv(L, tC), pl.cdiv(B, tR))
    return pl.pallas_call(
        _add_pe_kernel,
        out_shape=jax.ShapeDtypeStruct((B, L), x2.dtype),
        grid_spec=pltpu.PrefetchScalarGridSpec(
            num_scalar_prefetch=0,
            grid=grid,
            in_specs=[
                pl.BlockSpec((tR, tC), lambda c, r: (r, c)),
                pl.BlockSpec((1, tC), lambda c, r: (0, c)),
            ],
            out_specs=pl.BlockSpec((tR, tC), lambda c, r: (r, c)),
        ),
        # out = x + pe is an in-place update; alias x2 into the output so no extra
        # B*L HBM allocation (and no copy when the caller donates x).
        input_output_aliases={0: 0},
        compiler_params=pltpu.CompilerParams(
            dimension_semantics=("parallel", "parallel"),
            vmem_limit_bytes=vmem_limit,
        ),
    )(x2, pe2)


def positional_encoding_forward(x: jnp.ndarray, pe: jnp.ndarray,
                                *, force_pallas: bool = False) -> jnp.ndarray:
    """x: (B, S, D); pe: (max_len, D). Returns x + pe[:S] (broadcast over batch)."""
    B, S, D = x.shape
    max_len = pe.shape[0]
    if S > max_len:
        raise ValueError(f"seq_len={S} exceeds pe buffer max_len={max_len}")
    pe_slice = pe[:S].astype(x.dtype)  # matches self.pe[:seq_len]

    if not force_pallas and x.size < _MIN_PALLAS_ELEMS:
        # Tiny shapes: pallas launch/step overhead dominates; let XLA fuse the add.
        return x + pe_slice[None, :, :]

    # Lane-dense layout: flatten (S, D) -> L so the last block dim is a large
    # multiple of 128 (contiguous reshape, no data movement).
    L = S * D
    x2 = x.reshape(B, L)
    pe2 = pe_slice.reshape(1, L)
    out2 = _positional_encoding_pallas(x2, pe2)
    if out2 is None:
        # Graceful degradation (non-lane-aligned L too large for the VMEM budget).
        return x + pe_slice[None, :, :]
    return out2.reshape(B, S, D)


if __name__ == "__main__":
    # Small shapes consistent with the module: batch=2, seq=8, d_model=32, max_len=10
    B, S, D, MAX_LEN = 2, 8, 32, 10

    key = jax.random.PRNGKey(0)
    x = jax.random.normal(key, (B, S, D), dtype=jnp.float32)
    pe = make_positional_encoding(D, MAX_LEN)

    # Force the Pallas path so the kernel itself is exercised at the demo shape.
    out = jax.block_until_ready(positional_encoding_forward(x, pe, force_pallas=True))

    # Reference check against plain-JAX semantics of the PyTorch forward.
    ref = x + pe[:S][None, :, :]
    assert out.shape == (B, S, D)
    assert jnp.allclose(out, ref, atol=1e-6), "mismatch vs reference"

    # Auto path (tiny-shape bypass -> XLA-fused add) must agree too.
    out_auto = jax.block_until_ready(positional_encoding_forward(x, pe))
    assert jnp.allclose(out_auto, ref, atol=1e-6), "mismatch vs reference (fused path)"

    print("KERNEL_OK")
</pallas_src>

<mosaic_0001>
module attributes {stable_mosaic.version = 11 : i64} {
  func.func @_add_pe_kernel(%arg0: i32, %arg1: i32, %arg2: memref<2x256xf32, #tpu.memory_space<vmem>>, %arg3: memref<1x256xf32, #tpu.memory_space<vmem>>, %arg4: memref<2x256xf32, #tpu.memory_space<vmem>>) attributes {dimension_semantics = [#tpu.dimension_semantics<parallel>, #tpu.dimension_semantics<parallel>], iteration_bounds = array<i64: 1, 1>, scalar_prefetch = 0 : i64, scratch_operands = 0 : i64, tpu.core_type = #tpu.core_type<tc>, window_params = [{transform_indices = @transform_0, window_bounds = array<i64: 2, 256>}, {transform_indices = @transform_1, window_bounds = array<i64: 1, 256>}, {transform_indices = @transform_2, window_bounds = array<i64: 2, 256>}]} {
    %c0 = arith.constant 0 : index
    %c0_0 = arith.constant 0 : index
    %0 = vector.load %arg2[%c0, %c0_0] : memref<2x256xf32, #tpu.memory_space<vmem>>, vector<2x256xf32>
    %c0_1 = arith.constant 0 : index
    %c0_2 = arith.constant 0 : index
    %1 = vector.load %arg3[%c0_1, %c0_2] : memref<1x256xf32, #tpu.memory_space<vmem>>, vector<1x256xf32>
    %2 = vector.broadcast %1 : vector<1x256xf32> to vector<2x256xf32>
    %3 = arith.addf %0, %2 : vector<2x256xf32>
    %c0_3 = arith.constant 0 : index
    %c0_4 = arith.constant 0 : index
    %4 = vector.load %arg4[%c0_3, %c0_4] : memref<2x256xf32, #tpu.memory_space<vmem>>, vector<2x256xf32>
    tpu.vector_store %arg4[%c0_3, %c0_4], %3 {strides = array<i32>} : memref<2x256xf32, #tpu.memory_space<vmem>>, vector<2x256xf32>,
    return
  }
  func.func @transform_0(%arg0: i32, %arg1: i32) -> (i32, i32) {
    %c0_i32 = arith.constant 0 : i32
    return %arg1, %arg0 : i32, i32
  }
  func.func @transform_1(%arg0: i32, %arg1: i32) -> (i32, i32) {
    %c0_i32 = arith.constant 0 : i32
    %c0_i32_0 = arith.constant 0 : i32
    return %c0_i32, %arg0 : i32, i32
  }
  func.func @transform_2(%arg0: i32, %arg1: i32) -> (i32, i32) {
    %c0_i32 = arith.constant 0 : i32
    return %arg1, %arg0 : i32, i32
  }
}

</mosaic_0001>

<bundles_post_ra>
// kernel: tpu_custom_call.1
= control target key start
LH: loop header
LB: loop body
LE: loop exit
PB: predicated region body
PF: predicated region fallthrough
CT: control target
= control target key end

     0   :  { %7 = vsyncpa [#allocation3], 0  ;;  %s157_s0 = inlined_call_operand.hbm [shape: f32[2,256], index: 0, kind: input, shape index: {}, may-alias: {0,2}]   ;;  %s158_s1 = inlined_call_operand.vmem [shape: f32[1,256], index: 1, kind: input, shape index: {}]   ;;  %s159_s2 = inlined_call_operand.hbm [shape: f32[2,256], index: 2, kind: output, shape index: {}, may-alias: {0,2}]  }
   0x1   :  { %8 = vsyncpa [#allocation4], 0  ;;  %s112_s9 = smov [#allocation2]   ;;  %s64_s13 = scalar_lea.hbm %s157_s0, 64 }
   0x2   :  { %s15_s10 = sshll.u32 %s112_s9, 4  ;;  %p65_p0 = scmp.ne.s32.totalorder %s157_s0, %s64_s13  ;;  %s16_s10 = int_to_ptr.vmem [resolvable:$true] %s15_s10 }
   0x3   :  { %p68_p1 = scmp.lt.u32.totalorder %s64_s13, %s157_s0 }
   0x5   :  { %p70_p2 = pnand %p68_p1, %p65_p0 }
   0x7   :  { %73 = shalt.err (!%p70_p2)
}
   0x8   :  { %s74_s18 = scalar_lea.vmem %s16_s10, 64  ;;  %p79_p4 = scmp.lt.s32.totalorder %s16_s10, %s16_s10 }
   0x9   :  { %p75_p3 = scmp.ne.s32.totalorder %s16_s10, %s74_s18  ;;  %p80_p5 = scmp.lt.s32.totalorder %s74_s18, %s74_s18 }
   0xb   :  { %p81_p6 = por %p80_p5, %p79_p4 }
   0xd   :  { %p82_p7 = pnand %p81_p6, %p75_p3 }
   0xf   :  { %85 = shalt.err (!%p82_p7)
}
  0x10   :  { %18 = dma.hbm_to_vmem [thread:$0]  %s157_s0, 64, %s16_s10, [#allocation3]  }
  0x11   :  { %108 = dma.done.wait [#allocation3], 64  }
  0x12   :  { %109 = vsyncadd [#allocation3], 4294967232  ;;  %v27_v0 = vlaneseq  ;;  %v113_v1 = vmov 1983009808   ;;  %v25_v7 = vld [vmem:[%s158_s1] sm:$0x3] }
  0x13   :  { %v37_v2 = vunpack.c.l.s4 %v113_v1  ;;  %v24_v12 = vld [vmem:[#allocation2] sm:$0xf]  ;;  %s114_s23 = smov [#allocation5]  }
  0x14   :  { %v28_v3 = vshrl.u32 %v27_v0, 7  ;;  %s52_s0 = sshll.u32 %s114_s23, 4  ;;  %s53_s0 = int_to_ptr.vmem [resolvable:$true] %s52_s0 }
  0x15   :  { %v38_v6 = vunpack.c.0.s8 %v37_v2  ;;  %s86_s24 = scalar_lea.vmem %s53_s0, 64  ;;  %p91_p9 = scmp.lt.s32.totalorder %s53_s0, %s53_s0 }
  0x16   :  { %v29_v4 = vsub.s32 0, %v28_v3  ;;  %v33_v5 = vsub.s32 1, %v28_v3  ;;  %p87_p8 = scmp.ne.s32.totalorder %s53_s0, %s86_s24  ;;  %p92_p10 = scmp.lt.s32.totalorder %s86_s24, %s86_s24 }
  0x17   :  { %v41_v10 = vsub.s32 %v38_v6, %v28_v3 }
  0x18   :  { %v30_v8 = vrot.slane %v25_v7, %v29_v4  ;;  %v34_v9 = vrot.slane %v25_v7, %v33_v5  ;;  %p93_p11 = por %p92_p10, %p91_p9 }
  0x1a   :  { %v35_v11 = vcombine.low %v30_v8, %v34_v9  ;;  %p94_p12 = pnand %p93_p11, %p87_p8 }
  0x1c   :  { %v42_v13 = vrot.slane %v35_v11, %v41_v10 }
  0x1e   :  { %v44_v14 = vadd.f32 %v42_v13, %v24_v12 }
  0x20   :  { %45 = vst [vmem:[#allocation5] sm:$0xf] %v44_v14 }
  0x21   :  { %97 = shalt.err (!%p94_p12)
}
  0x22   :  { %s98_s26 = scalar_lea.hbm %s159_s2, 64 }
  0x23   :  { %p99_p13 = scmp.ne.s32.totalorder %s159_s2, %s98_s26  ;;  %p102_p0 = scmp.lt.u32.totalorder %s98_s26, %s159_s2 }
  0x25   :  { %p104_p1 = pnand %p102_p0, %p99_p13 }
  0x27   :  { %107 = shalt.err (!%p104_p1)
}
  0x28   :  { %55 = dma.vmem_to_hbm [thread:$0]  %s53_s0, 64, %s159_s2, [#allocation4]  }
  0x29   :  { %110 = dma.done.wait [#allocation4], 64  }
  0x2a   :  { %111 = vsyncadd [#allocation4], 4294967232 }
  0x2b   :  { %59 = vsyncpa [#allocation3], 1 }
  0x2c   :  { %60 = vsyncpa [#allocation4], 1 }

</bundles_post_ra>
